<compile_context>
chip_gen: v5e
topology: v5e:2x2
jax: 0.10.0
libtpu: 0.0.40
codegen_flags: <defaults>
</compile_context>

<pallas_src>
import functools

import jax
import jax.numpy as jnp
from jax.experimental import pallas as pl
from jax.experimental.pallas import tpu as pltpu


def _round_up(x: int, n: int) -> int:
    return ((x + n - 1) // n) * n


def _cdiv(a: int, b: int) -> int:
    return -(-a // b)


def _vmem_capacity_bytes() -> int:
    """Physical VMEM per TensorCore; conservative default if query fails."""
    try:
        cap = int(pltpu.get_tpu_info().vmem_capacity_bytes)
        if cap > 0:
            return cap
    except Exception:
        pass
    return 64 << 20  # v7x per-core figure; safe lower bound everywhere


def _block_spec(shape, index_map, buffers=None):
    """BlockSpec with an optional buffer-count; falls back if the installed
    jax doesn't support the pipeline_mode kwarg."""
    if buffers is None:
        return pl.BlockSpec(shape, index_map)
    try:
        return pl.BlockSpec(shape, index_map, pipeline_mode=pl.Buffered(buffers))
    except TypeError:
        return pl.BlockSpec(shape, index_map)


# --------------------------------------------------------------------------
# Fused kernel: all (padded) weights resident in VMEM, tokens streamed.
# Ref order: x, (w0, b0), (w1, b1), ..., out.
# --------------------------------------------------------------------------
def make_mlp_kernel(num_layers: int, sigmoid_output: bool):
    def kernel(*refs):
        x_ref = refs[0]
        out_ref = refs[-1]
        h = x_ref[...]                                     # native dtype
        for i in range(num_layers):
            w = refs[1 + 2 * i][...]                       # (k_p, n_p) native dtype
            b = refs[2 + 2 * i][...].astype(jnp.float32)   # (1, n_p) f32
            # MXU consumes operands in the weights' dtype, accumulates in f32.
            h = jnp.dot(h.astype(w.dtype), w,
                        preferred_element_type=jnp.float32) + b
            if i < num_layers - 1:
                h = jnp.maximum(h, 0.0)                    # ReLU (VPU)
        if sigmoid_output:
            h = jax.nn.sigmoid(h)                          # EUP
        out_ref[...] = h.astype(out_ref.dtype)

    return kernel


# --------------------------------------------------------------------------
# Streamed fallback: one tiled-matmul pallas_call per layer (weights streamed
# over K/N), bias + activation fused into the final K step.
# --------------------------------------------------------------------------
def _pick_tile(dim: int, candidates) -> int:
    for c in candidates:
        if dim % c == 0:
            return c
    return dim


def _linear_pallas(h, w, b, activation, *, out_dtype, vmem_limit):
    m_p, k_p = h.shape
    n_p = w.shape[1]
    tm = _pick_tile(m_p, (512, 256, 128, 64, 32, 16, 8))
    tk = _pick_tile(k_p, (512, 256, 128))
    tn = _pick_tile(n_p, (512, 256, 128))

    def kernel(x_ref, w_ref, b_ref, o_ref, acc_ref):
        @pl.when(pl.program_id(2) == 0)
        def _():
            acc_ref[...] = jnp.zeros_like(acc_ref)

        acc_ref[...] += jnp.dot(x_ref[...], w_ref[...],
                                preferred_element_type=jnp.float32)

        @pl.when(pl.program_id(2) == pl.num_programs(2) - 1)
        def _():
            r = acc_ref[...] + b_ref[...].astype(jnp.float32)
            if activation == "relu":
                r = jnp.maximum(r, 0.0)
            elif activation == "sigmoid":
                r = jax.nn.sigmoid(r)
            o_ref[...] = r.astype(o_ref.dtype)

    return pl.pallas_call(
        kernel,
        out_shape=jax.ShapeDtypeStruct((m_p, n_p), out_dtype),
        grid=(m_p // tm, n_p // tn, k_p // tk),
        in_specs=[pl.BlockSpec((tm, tk), lambda i, j, k: (i, k)),
                  pl.BlockSpec((tk, tn), lambda i, j, k: (k, j)),
                  pl.BlockSpec((1, tn), lambda i, j, k: (0, j))],
        out_specs=pl.BlockSpec((tm, tn), lambda i, j, k: (i, j)),
        scratch_shapes=[pltpu.VMEM((tm, tn), jnp.float32)],
        compiler_params=pltpu.CompilerParams(
            dimension_semantics=("parallel", "parallel", "arbitrary"),
            vmem_limit_bytes=int(vmem_limit)),
    )(h, w, b)


# --------------------------------------------------------------------------
# Wrapper
# --------------------------------------------------------------------------
def mlp_pallas(x, weights, biases, *, sigmoid_output=False,
               use_bf16_operands=False, force_streamed=False):
    """MLP forward.  x: [..., input_dim]; weights[i]: (in_i, out_i) (transpose
    of nn.Linear's weight); biases[i]: (out_i,) or (1, out_i)."""
    num_layers = len(weights)
    assert len(biases) == num_layers
    in_dim = x.shape[-1]
    out_dim = weights[-1].shape[1]
    lead_shape = x.shape[:-1]
    out_dtype = x.dtype
    operand_dtype = jnp.bfloat16 if use_bf16_operands else x.dtype

    # ---- pad every layer dim (K and N) to a lane-dense multiple of 128 ----
    dims = [in_dim] + [w.shape[1] for w in weights]         # [K0, N0, N1, ...]
    dims_p = [_round_up(d, 128) for d in dims]
    in_p, out_p = dims_p[0], dims_p[-1]
    max_dim_p = max(dims_p)

    w_p, b_p = [], []
    for i, (w, b) in enumerate(zip(weights, biases)):
        kp, np_ = dims_p[i], dims_p[i + 1]
        w_p.append(jnp.pad(w.astype(operand_dtype),
                           ((0, kp - w.shape[0]), (0, np_ - w.shape[1]))))
        b2 = b.reshape(1, -1).astype(jnp.float32)
        b_p.append(jnp.pad(b2, ((0, 0), (0, np_ - b2.shape[-1]))))

    x2 = x.reshape(-1, in_dim).astype(operand_dtype)
    m = x2.shape[0]

    x_itemsize = jnp.dtype(operand_dtype).itemsize
    out_itemsize = jnp.dtype(out_dtype).itemsize
    param_bytes = (sum(w.size * w.dtype.itemsize for w in w_p)
                   + sum(b.size * b.dtype.itemsize for b in b_p))

    # ---- generation-aware VMEM budget ----
    vmem_cap = _vmem_capacity_bytes()
    big_vmem = vmem_cap >= (100 << 20)                 # v5e/v6e (128 MiB) vs v7x (64 MiB)
    vmem_budget = max(32 << 20, (vmem_cap * 13) // 16)  # ~104 MiB / ~52 MiB
    x_bufs = 3 if big_vmem else 2                       # deeper x pipeline on 128-MiB parts
    headroom = 4 << 20
    # Per token row: x tiles + double-buffered out tiles + f32 intermediates.
    per_row = (x_bufs * in_p * x_itemsize + 2 * out_p * out_itemsize
               + 2 * max_dim_p * 4)

    fused_fits = (param_bytes + headroom + per_row * 16) <= vmem_budget

    if force_streamed or not fused_fits:
        # ---- weight-streaming fallback (params don't fit VMEM) ----
        tm_s = 512 if m >= 512 else _round_up(m, 8)
        m_p = _round_up(m, tm_s)
        h = jnp.pad(x2, ((0, m_p - m), (0, in_p - in_dim)))
        for i in range(num_layers):
            if i < num_layers - 1:
                act = "relu"
            elif sigmoid_output:
                act = "sigmoid"
            else:
                act = "none"
            layer_dtype = operand_dtype if i < num_layers - 1 else out_dtype
            h = _linear_pallas(h, w_p[i], b_p[i], act,
                               out_dtype=layer_dtype, vmem_limit=vmem_budget)
        return h[:m, :out_dim].reshape(lead_shape + (out_dim,))

    # ---- fused path: balanced token tiles, weights resident ----
    avail = vmem_budget - param_bytes - headroom
    tm_cap_hw = 2048 if big_vmem else 1024
    tm_cap = min(tm_cap_hw, max(16, (avail // per_row) // 16 * 16))

    steps = _cdiv(m, tm_cap)
    # On 64-MiB-VMEM parts (v7x: 2 TensorCores/chip), make sure the "parallel"
    # token axis has >= 2 tiles so the second core has work.
    if (not big_vmem) and steps == 1 and m >= 32:
        steps = 2
    tm = _round_up(_cdiv(m, steps), 16)
    m_p = tm * steps
    grid = (steps,)
    x2p = jnp.pad(x2, ((0, m_p - m), (0, in_p - in_dim)))

    kernel = make_mlp_kernel(num_layers, sigmoid_output)

    # x tiled over tokens (2- or 3-deep pipeline); params single-buffered
    # full-array resident blocks (constant index_map).
    in_specs = [_block_spec((tm, in_p), lambda i: (i, 0), buffers=x_bufs)]
    flat_params = []
    for w, b in zip(w_p, b_p):
        in_specs.append(_block_spec(w.shape, lambda i: (0, 0), buffers=1))
        in_specs.append(_block_spec(b.shape, lambda i: (0, 0), buffers=1))
        flat_params.extend([w, b])
    out_specs = pl.BlockSpec((tm, out_p), lambda i: (i, 0))

    # ---- cost estimate + VMEM limit ----
    flops = 2 * m_p * sum(dims_p[i] * dims_p[i + 1] for i in range(num_layers))
    transcendentals = m_p * out_p if sigmoid_output else 0
    bytes_accessed = (m_p * in_p * x_itemsize + param_bytes
                      + m_p * out_p * out_itemsize)
    cost = pl.CostEstimate(flops=flops, transcendentals=transcendentals,
                           bytes_accessed=bytes_accessed)

    vmem_needed = (x_bufs * tm * in_p * x_itemsize
                   + 2 * tm * out_p * out_itemsize
                   + param_bytes                      # single-buffered residents
                   + 2 * tm * max_dim_p * 4           # f32 intermediate activations
                   + headroom)
    vmem_limit = int(min(vmem_budget, max(vmem_needed, 32 << 20)))

    out = pl.pallas_call(
        kernel,
        out_shape=jax.ShapeDtypeStruct((m_p, out_p), out_dtype),
        grid=grid,
        in_specs=in_specs,
        out_specs=out_specs,
        cost_estimate=cost,
        compiler_params=pltpu.CompilerParams(
            dimension_semantics=("parallel",),
            vmem_limit_bytes=vmem_limit),
    )(x2p, *flat_params)

    return out[:m, :out_dim].reshape(lead_shape + (out_dim,))


# --------------------------------------------------------------------------
# Reference + synthetic init
# --------------------------------------------------------------------------
def mlp_reference(x, weights, biases, *, sigmoid_output=False):
    """Plain-JAX reference mirroring the PyTorch forward."""
    num_layers = len(weights)
    h = x.astype(jnp.float32)
    for i, (w, b) in enumerate(zip(weights, biases)):
        h = h @ w.astype(jnp.float32) + b.reshape(1, -1).astype(jnp.float32)
        if i < num_layers - 1:
            h = jnp.maximum(h, 0.0)
    if sigmoid_output:
        h = jax.nn.sigmoid(h)
    return h.reshape(x.shape[:-1] + (weights[-1].shape[1],)).astype(x.dtype)


def init_mlp_params(key, input_dim, hidden_dim, output_dim, num_layers):
    """Synthetic init matching nn.Linear shapes (weights stored as (in, out))."""
    h = [hidden_dim] * (num_layers - 1)
    dims_in = [input_dim] + h
    dims_out = h + [output_dim]
    weights, biases = [], []
    for n, k in zip(dims_in, dims_out):
        key, wk, bk = jax.random.split(key, 3)
        bound = 1.0 / (n ** 0.5)
        weights.append(jax.random.uniform(wk, (n, k), jnp.float32,
                                          minval=-bound, maxval=bound))
        biases.append(jax.random.uniform(bk, (1, k), jnp.float32,
                                         minval=-bound, maxval=bound))
    return weights, biases


if __name__ == "__main__":
    batch, seq = 2, 8
    input_dim, hidden_dim, output_dim, num_layers = 32, 64, 16, 3

    key = jax.random.PRNGKey(0)
    key, xk, pk = jax.random.split(key, 3)
    x = jax.random.normal(xk, (batch, seq, input_dim), jnp.float32)
    weights, biases = init_mlp_params(pk, input_dim, hidden_dim,
                                      output_dim, num_layers)

    # 1) fused path, f32 operands, sigmoid output
    run = jax.jit(functools.partial(mlp_pallas, sigmoid_output=True))
    out = jax.block_until_ready(run(x, weights, biases))
    ref = mlp_reference(x, weights, biases, sigmoid_output=True)
    assert out.shape == (batch, seq, output_dim)
    assert jnp.allclose(out, ref, atol=1e-5, rtol=1e-5), "mismatch (fused/f32)"

    # 2) fused path, token count not aligned to the tile, no sigmoid
    x_tail = jax.random.normal(key, (3, 7, input_dim), jnp.float32)
    out2 = jax.block_until_ready(
        jax.jit(functools.partial(mlp_pallas, sigmoid_output=False))(
            x_tail, weights, biases))
    ref2 = mlp_reference(x_tail, weights, biases, sigmoid_output=False)
    assert out2.shape == (3, 7, output_dim)
    assert jnp.allclose(out2, ref2, atol=1e-5, rtol=1e-5), "mismatch (fused/tail)"

    # 3) streamed-weights fallback (forced, to exercise the wide-MLP path)
    out3 = jax.block_until_ready(
        jax.jit(functools.partial(mlp_pallas, sigmoid_output=True,
                                  force_streamed=True))(x, weights, biases))
    assert out3.shape == (batch, seq, output_dim)
    assert jnp.allclose(out3, ref, atol=1e-5, rtol=1e-5), "mismatch (streamed)"

    # 4) bf16 MXU operands (f32 accumulation) -- looser tolerance vs f32 ref
    out4 = jax.block_until_ready(
        jax.jit(functools.partial(mlp_pallas, sigmoid_output=True,
                                  use_bf16_operands=True))(x, weights, biases))
    assert out4.shape == (batch, seq, output_dim)
    assert jnp.allclose(out4, ref, atol=5e-2, rtol=5e-2), "mismatch (bf16)"

    print("KERNEL_OK")
</pallas_src>

<mosaic_0001>
module attributes {stable_mosaic.version = 11 : i64} {
  func.func @kernel(%arg0: i32, %arg1: memref<16x128xf32, #tpu.memory_space<vmem>>, %arg2: memref<128x128xf32, #tpu.memory_space<vmem>>, %arg3: memref<1x128xf32, #tpu.memory_space<vmem>>, %arg4: memref<128x128xf32, #tpu.memory_space<vmem>>, %arg5: memref<1x128xf32, #tpu.memory_space<vmem>>, %arg6: memref<128x128xf32, #tpu.memory_space<vmem>>, %arg7: memref<1x128xf32, #tpu.memory_space<vmem>>, %arg8: memref<16x128xf32, #tpu.memory_space<vmem>>) attributes {dimension_semantics = [#tpu.dimension_semantics<parallel>], iteration_bounds = array<i64: 1>, scalar_prefetch = 0 : i64, scratch_operands = 0 : i64, tpu.core_type = #tpu.core_type<tc>, window_params = [{pipeline_mode = #tpu.pipeline_mode<double_buffered>, transform_indices = @transform_0, window_bounds = array<i64: 16, 128>}, {pipeline_mode = #tpu.pipeline_mode<synchronous>, transform_indices = @transform_1, window_bounds = array<i64: 128, 128>}, {pipeline_mode = #tpu.pipeline_mode<synchronous>, transform_indices = @transform_2, window_bounds = array<i64: 1, 128>}, {pipeline_mode = #tpu.pipeline_mode<synchronous>, transform_indices = @transform_3, window_bounds = array<i64: 128, 128>}, {pipeline_mode = #tpu.pipeline_mode<synchronous>, transform_indices = @transform_4, window_bounds = array<i64: 1, 128>}, {pipeline_mode = #tpu.pipeline_mode<synchronous>, transform_indices = @transform_5, window_bounds = array<i64: 128, 128>}, {pipeline_mode = #tpu.pipeline_mode<synchronous>, transform_indices = @transform_6, window_bounds = array<i64: 1, 128>}, {transform_indices = @transform_7, window_bounds = array<i64: 16, 128>}]} {
    %c0 = arith.constant 0 : index
    %c0_0 = arith.constant 0 : index
    %0 = vector.load %arg1[%c0, %c0_0] : memref<16x128xf32, #tpu.memory_space<vmem>>, vector<16x128xf32>
    %c0_1 = arith.constant 0 : index
    %c0_2 = arith.constant 0 : index
    %1 = vector.load %arg2[%c0_1, %c0_2] : memref<128x128xf32, #tpu.memory_space<vmem>>, vector<128x128xf32>
    %c0_3 = arith.constant 0 : index
    %c0_4 = arith.constant 0 : index
    %2 = vector.load %arg3[%c0_3, %c0_4] : memref<1x128xf32, #tpu.memory_space<vmem>>, vector<1x128xf32>
    %cst = arith.constant dense<0.000000e+00> : vector<16x128xf32>
    %3 = tpu.matmul %0, %1, %cst {dimension_numbers = #tpu.dot_dimension_numbers<[1], [0], [0], [1], [0, 0, 1, 1], [], []>} : vector<16x128xf32>, vector<128x128xf32>, vector<16x128xf32> -> vector<16x128xf32>
    %4 = vector.broadcast %2 : vector<1x128xf32> to vector<16x128xf32>
    %5 = arith.addf %3, %4 : vector<16x128xf32>
    %cst_5 = arith.constant 0.000000e+00 : f32
    %6 = vector.broadcast %cst_5 : f32 to vector<16x128xf32>
    %7 = arith.maximumf %5, %6 : vector<16x128xf32>
    %c0_6 = arith.constant 0 : index
    %c0_7 = arith.constant 0 : index
    %8 = vector.load %arg4[%c0_6, %c0_7] : memref<128x128xf32, #tpu.memory_space<vmem>>, vector<128x128xf32>
    %c0_8 = arith.constant 0 : index
    %c0_9 = arith.constant 0 : index
    %9 = vector.load %arg5[%c0_8, %c0_9] : memref<1x128xf32, #tpu.memory_space<vmem>>, vector<1x128xf32>
    %cst_10 = arith.constant dense<0.000000e+00> : vector<16x128xf32>
    %10 = tpu.matmul %7, %8, %cst_10 {dimension_numbers = #tpu.dot_dimension_numbers<[1], [0], [0], [1], [0, 0, 1, 1], [], []>} : vector<16x128xf32>, vector<128x128xf32>, vector<16x128xf32> -> vector<16x128xf32>
    %11 = vector.broadcast %9 : vector<1x128xf32> to vector<16x128xf32>
    %12 = arith.addf %10, %11 : vector<16x128xf32>
    %cst_11 = arith.constant 0.000000e+00 : f32
    %13 = vector.broadcast %cst_11 : f32 to vector<16x128xf32>
    %14 = arith.maximumf %12, %13 : vector<16x128xf32>
    %c0_12 = arith.constant 0 : index
    %c0_13 = arith.constant 0 : index
    %15 = vector.load %arg6[%c0_12, %c0_13] : memref<128x128xf32, #tpu.memory_space<vmem>>, vector<128x128xf32>
    %c0_14 = arith.constant 0 : index
    %c0_15 = arith.constant 0 : index
    %16 = vector.load %arg7[%c0_14, %c0_15] : memref<1x128xf32, #tpu.memory_space<vmem>>, vector<1x128xf32>
    %cst_16 = arith.constant dense<0.000000e+00> : vector<16x128xf32>
    %17 = tpu.matmul %14, %15, %cst_16 {dimension_numbers = #tpu.dot_dimension_numbers<[1], [0], [0], [1], [0, 0, 1, 1], [], []>} : vector<16x128xf32>, vector<128x128xf32>, vector<16x128xf32> -> vector<16x128xf32>
    %18 = vector.broadcast %16 : vector<1x128xf32> to vector<16x128xf32>
    %19 = arith.addf %17, %18 : vector<16x128xf32>
    %20 = arith.negf %19 : vector<16x128xf32>
    %21 = math.exp %20 : vector<16x128xf32>
    %cst_17 = arith.constant 1.000000e+00 : f32
    %22 = vector.broadcast %cst_17 : f32 to vector<16x128xf32>
    %23 = arith.addf %22, %21 : vector<16x128xf32>
    %24 = arith.divf %22, %23 : vector<16x128xf32>
    %c0_18 = arith.constant 0 : index
    %c0_19 = arith.constant 0 : index
    %25 = vector.load %arg8[%c0_18, %c0_19] : memref<16x128xf32, #tpu.memory_space<vmem>>, vector<16x128xf32>
    tpu.vector_store %arg8[%c0_18, %c0_19], %24 {strides = array<i32>} : memref<16x128xf32, #tpu.memory_space<vmem>>, vector<16x128xf32>,
    return
  }
  func.func @transform_0(%arg0: i32) -> (i32, i32) {
    %c0_i32 = arith.constant 0 : i32
    %c0_i32_0 = arith.constant 0 : i32
    return %arg0, %c0_i32 : i32, i32
  }
  func.func @transform_1(%arg0: i32) -> (i32, i32) {
    %c0_i32 = arith.constant 0 : i32
    %c0_i32_0 = arith.constant 0 : i32
    %c0_i32_1 = arith.constant 0 : i32
    return %c0_i32, %c0_i32_0 : i32, i32
  }
  func.func @transform_2(%arg0: i32) -> (i32, i32) {
    %c0_i32 = arith.constant 0 : i32
    %c0_i32_0 = arith.constant 0 : i32
    %c0_i32_1 = arith.constant 0 : i32
    return %c0_i32, %c0_i32_0 : i32, i32
  }
  func.func @transform_3(%arg0: i32) -> (i32, i32) {
    %c0_i32 = arith.constant 0 : i32
    %c0_i32_0 = arith.constant 0 : i32
    %c0_i32_1 = arith.constant 0 : i32
    return %c0_i32, %c0_i32_0 : i32, i32
  }
  func.func @transform_4(%arg0: i32) -> (i32, i32) {
    %c0_i32 = arith.constant 0 : i32
    %c0_i32_0 = arith.constant 0 : i32
    %c0_i32_1 = arith.constant 0 : i32
    return %c0_i32, %c0_i32_0 : i32, i32
  }
  func.func @transform_5(%arg0: i32) -> (i32, i32) {
    %c0_i32 = arith.constant 0 : i32
    %c0_i32_0 = arith.constant 0 : i32
    %c0_i32_1 = arith.constant 0 : i32
    return %c0_i32, %c0_i32_0 : i32, i32
  }
  func.func @transform_6(%arg0: i32) -> (i32, i32) {
    %c0_i32 = arith.constant 0 : i32
    %c0_i32_0 = arith.constant 0 : i32
    %c0_i32_1 = arith.constant 0 : i32
    return %c0_i32, %c0_i32_0 : i32, i32
  }
  func.func @transform_7(%arg0: i32) -> (i32, i32) {
    %c0_i32 = arith.constant 0 : i32
    %c0_i32_0 = arith.constant 0 : i32
    return %arg0, %c0_i32 : i32, i32
  }
}

</mosaic_0001>

<bundles_post_ra>
// kernel: mlp_pallas.1
= control target key start
LH: loop header
LB: loop body
LE: loop exit
PB: predicated region body
PF: predicated region fallthrough
CT: control target
= control target key end

     0   :  { %s439_s1 = inlined_call_operand.vmem [shape: f32[128,128], index: 1, kind: input, shape index: {}]   ;;  %s440_s3 = inlined_call_operand.vmem [shape: f32[128,128], index: 3, kind: input, shape index: {}]   ;;  %s441_s2 = inlined_call_operand.vmem [shape: f32[1,128], index: 2, kind: input, shape index: {}]   ;;  %s442_s0 = inlined_call_operand.vmem [shape: f32[16,128], index: 0, kind: input, shape index: {}]   ;;  %s443_s4 = inlined_call_operand.vmem [shape: f32[1,128], index: 4, kind: input, shape index: {}]   ;;  %s444_s5 = inlined_call_operand.vmem [shape: f32[128,128], index: 5, kind: input, shape index: {}]   ;;  %s445_s6 = inlined_call_operand.vmem [shape: f32[1,128], index: 6, kind: input, shape index: {}]   ;;  %s446_s7 = inlined_call_operand.vmem [shape: f32[16,128], index: 7, kind: output, shape index: {}]  }
   0x1   :  { %v43_v0 = vld [vmem:[%s439_s1 + $0x78] sm:$0xff]  ;;  %v42_v1 = vld [vmem:[%s439_s1 + $0x70] sm:$0xff]  ;;  %v41_v2 = vld [vmem:[%s439_s1 + $0x68] sm:$0xff] }
   0x2   :  { %48 = vmatpush.msra.mxu0 %v43_v0  ;;  %207 = vmatpush.msra.mxu3 %v43_v0  ;;  %v40_v3 = vld [vmem:[%s439_s1 + $0x60] sm:$0xff]  ;;  %v39_v4 = vld [vmem:[%s439_s1 + $0x58] sm:$0xff]  ;;  %v87_v6 = vld [vmem:[%s440_s3 + $0x70] sm:$0xff] }
   0x3   :  { %v88_v5 = vld [vmem:[%s440_s3 + $0x78] sm:$0xff]  ;;  %v38_v7 = vld [vmem:[%s439_s1 + $0x50] sm:$0xff]  ;;  %v86_v8 = vld [vmem:[%s440_s3 + $0x68] sm:$0xff] }
   0x4   :  { %49 = vmatpush.msra.mxu0 %v42_v1  ;;  %208 = vmatpush.msra.mxu3 %v42_v1  ;;  %v37_v9 = vld [vmem:[%s439_s1 + $0x48] sm:$0xff]  ;;  %v85_v10 = vld [vmem:[%s440_s3 + $0x60] sm:$0xff]  ;;  %v84_v12 = vld [vmem:[%s440_s3 + $0x58] sm:$0xff] }
   0x5   :  { %93 = vmatpush.msra.mxu1 %v88_v5  ;;  %v36_v11 = vld [vmem:[%s439_s1 + $0x40] sm:$0xff]  ;;  %v35_v13 = vld [vmem:[%s439_s1 + $0x38] sm:$0xff]  ;;  %v83_v14 = vld [vmem:[%s440_s3 + $0x50] sm:$0xff] }
   0x6   :  { %50 = vmatpush.msra.mxu0 %v41_v2  ;;  %209 = vmatpush.msra.mxu3 %v41_v2  ;;  %v34_v15 = vld [vmem:[%s439_s1 + $0x30] sm:$0xff]  ;;  %v82_v16 = vld [vmem:[%s440_s3 + $0x48] sm:$0xff]  ;;  %v81_v18 = vld [vmem:[%s440_s3 + $0x40] sm:$0xff] }
   0x7   :  { %94 = vmatpush.msra.mxu1 %v87_v6  ;;  %v33_v17 = vld [vmem:[%s439_s1 + $0x28] sm:$0xff]  ;;  %v32_v19 = vld [vmem:[%s439_s1 + $0x20] sm:$0xff]  ;;  %v80_v20 = vld [vmem:[%s440_s3 + $0x38] sm:$0xff] }
   0x8   :  { %51 = vmatpush.msra.mxu0 %v40_v3  ;;  %210 = vmatpush.msra.mxu3 %v40_v3  ;;  %v31_v21 = vld [vmem:[%s439_s1 + $0x18] sm:$0xff]  ;;  %v79_v22 = vld [vmem:[%s440_s3 + $0x30] sm:$0xff]  ;;  %v78_v24 = vld [vmem:[%s440_s3 + $0x28] sm:$0xff] }
   0x9   :  { %95 = vmatpush.msra.mxu1 %v86_v8  ;;  %v30_v23 = vld [vmem:[%s439_s1 + $0x10] sm:$0xff]  ;;  %v29_v25 = vld [vmem:[%s439_s1 + $0x8] sm:$0xff]  ;;  %v77_v26 = vld [vmem:[%s440_s3 + $0x20] sm:$0xff] }
   0xa   :  { %52 = vmatpush.msra.mxu0 %v39_v4  ;;  %211 = vmatpush.msra.mxu3 %v39_v4  ;;  %v28_v27 = vld [vmem:[%s439_s1] sm:$0xff]  ;;  %v27_v29 = vld [vmem:[%s442_s0 + $0x8] sm:$0xff]  ;;  %v76_v30 = vld [vmem:[%s440_s3 + $0x18] sm:$0xff] }
   0xb   :  { %96 = vmatpush.msra.mxu1 %v85_v10  ;;  %v26_v28 = vld [vmem:[%s442_s0] sm:$0xff]  ;;  %v75_v31 = vld [vmem:[%s440_s3 + $0x10] sm:$0xff]  ;;  %v74_v32 = vld [vmem:[%s440_s3 + $0x8] sm:$0xff] }
   0xc   :  { %53 = vmatpush.msra.mxu0 %v38_v7  ;;  %212 = vmatpush.msra.mxu3 %v38_v7  ;;  %v73_v33 = vld [vmem:[%s440_s3] sm:$0xff]  ;;  %v133_v34 = vld [vmem:[%s444_s5 + $0x78] sm:$0xff]  ;;  %v132_v35 = vld [vmem:[%s444_s5 + $0x70] sm:$0xff] }
   0xd   :  { %97 = vmatpush.msra.mxu1 %v84_v12  ;;  %138 = vmatpush.msra.mxu2 %v133_v34  ;;  %v131_v36 = vld [vmem:[%s444_s5 + $0x68] sm:$0xff]  ;;  %v130_v37 = vld [vmem:[%s444_s5 + $0x60] sm:$0xff]  ;;  %v129_v38 = vld [vmem:[%s444_s5 + $0x58] sm:$0xff] }
   0xe   :  { %54 = vmatpush.msra.mxu0 %v37_v9  ;;  %213 = vmatpush.msra.mxu3 %v37_v9  ;;  %v128_v39 = vld [vmem:[%s444_s5 + $0x50] sm:$0xff]  ;;  %v127_v40 = vld [vmem:[%s444_s5 + $0x48] sm:$0xff]  ;;  %v126_v41 = vld [vmem:[%s444_s5 + $0x40] sm:$0xff] }
   0xf   :  { %98 = vmatpush.msra.mxu1 %v83_v14  ;;  %139 = vmatpush.msra.mxu2 %v132_v35  ;;  %v125_v42 = vld [vmem:[%s444_s5 + $0x38] sm:$0xff]  ;;  %v223_v43 = vld [vmem:[%s441_s2] ss:$0 sm:$0xff]  ;;  %v124_v44 = vld [vmem:[%s444_s5 + $0x30] sm:$0xff] }
  0x10   :  { %55 = vmatpush.msra.mxu0 %v36_v11  ;;  %214 = vmatpush.msra.mxu3 %v36_v11  ;;  %v123_v45 = vld [vmem:[%s444_s5 + $0x28] sm:$0xff]  ;;  %v122_v48 = vld [vmem:[%s444_s5 + $0x20] sm:$0xff]  ;;  %v121_v50 = vld [vmem:[%s444_s5 + $0x18] sm:$0xff] }
  0x11   :  { %99 = vmatpush.msra.mxu1 %v82_v16  ;;  %140 = vmatpush.msra.mxu2 %v131_v36  ;;  %v120_v54 = vld [vmem:[%s444_s5 + $0x10] sm:$0xff]  ;;  %v119_v55 = vld [vmem:[%s444_s5 + $0x8] sm:$0xff]  ;;  %v118_v56 = vld [vmem:[%s444_s5] sm:$0xff] }
  0x12   :  { %56 = vmatpush.msra.mxu0 %v35_v13  ;;  %215 = vmatpush.msra.mxu3 %v35_v13  ;;  %v224_v57 = vld [vmem:[%s443_s4] ss:$0 sm:$0xff] }
  0x13   :  { %100 = vmatpush.msra.mxu1 %v81_v18  ;;  %141 = vmatpush.msra.mxu2 %v130_v37  ;;  %v225_v0 = vld [vmem:[%s445_s6] ss:$0 sm:$0xff] }
  0x14   :  { %57 = vmatpush.msra.mxu0 %v34_v15  ;;  %216 = vmatpush.msra.mxu3 %v34_v15 }
  0x15   :  { %101 = vmatpush.msra.mxu1 %v80_v20  ;;  %142 = vmatpush.msra.mxu2 %v129_v38 }
  0x16   :  { %58 = vmatpush.msra.mxu0 %v33_v17  ;;  %217 = vmatpush.msra.mxu3 %v33_v17 }
  0x17   :  { %102 = vmatpush.msra.mxu1 %v79_v22  ;;  %143 = vmatpush.msra.mxu2 %v128_v39 }
  0x18   :  { %59 = vmatpush.msra.mxu0 %v32_v19  ;;  %218 = vmatpush.msra.mxu3 %v32_v19 }
  0x19   :  { %103 = vmatpush.msra.mxu1 %v78_v24  ;;  %144 = vmatpush.msra.mxu2 %v127_v40 }
  0x1a   :  { %60 = vmatpush.msra.mxu0 %v31_v21  ;;  %219 = vmatpush.msra.mxu3 %v31_v21 }
  0x1b   :  { %104 = vmatpush.msra.mxu1 %v77_v26  ;;  %145 = vmatpush.msra.mxu2 %v126_v41 }
  0x1c   :  { %61 = vmatpush.msra.mxu0 %v30_v23  ;;  %220 = vmatpush.msra.mxu3 %v30_v23 }
  0x1d   :  { %105 = vmatpush.msra.mxu1 %v76_v30  ;;  %146 = vmatpush.msra.mxu2 %v125_v42 }
  0x1e   :  { %62 = vmatpush.msra.mxu0 %v29_v25  ;;  %221 = vmatpush.msra.mxu3 %v29_v25 }
  0x1f   :  { %106 = vmatpush.msra.mxu1 %v75_v31  ;;  %147 = vmatpush.msra.mxu2 %v124_v44 }
  0x20   :  { %63 = vmatpush.msra.mxu0 %v28_v27  ;;  %222 = vmatpush.msra.mxu3 %v28_v27 }
  0x21   :  { %64 = vmatmul.f32.vlgmr.msra.gmra.mxu0 %v26_v28  ;;  %67 = vmatmul.f32.vlgmr.msra.gmra.mxu3 %v27_v29 }
  0x22   :  { %107 = vmatpush.msra.mxu1 %v74_v32  ;;  %148 = vmatpush.msra.mxu2 %v123_v45 }
  0x24   :  { %108 = vmatpush.msra.mxu1 %v73_v33  ;;  %149 = vmatpush.msra.mxu2 %v122_v48 }
  0x26   :  { %150 = vmatpush.msra.mxu2 %v121_v50 }
  0x28   :  { %151 = vmatpush.msra.mxu2 %v120_v54 }
  0x2a   :  { %152 = vmatpush.msra.mxu2 %v119_v55 }
  0x2c   :  { %153 = vmatpush.msra.mxu2 %v118_v56 }
  0x9e   :  { %v65_v46 = vpop.f32.mrf.mxu0 }
  0x9f   :  { %v66_v47 = vadd.f32 %v223_v43, %v65_v46 }
  0xa1   :  { %v71_v49 = vmax.f32 %v66_v47, 0.0 }
  0xa3   :  { %109 = vmatmul.f32.vlgmr.msra.gmra.mxu1 %v71_v49 }
  0xa4   :  { %v68_v51 = vpop.f32.mrf.mxu3 }
  0xa5   :  { %v69_v52 = vadd.f32 %v223_v43, %v68_v51 }
  0xa7   :  { %v72_v53 = vmax.f32 %v69_v52, 0.0 }
  0xab   :  { %112 = vmatmul.f32.gmra.mxu1 %v72_v53 }
 0x120   :  { %v110_v58 = vpop.f32.mrf.mxu1 }
 0x121   :  { %v111_v59 = vadd.f32 %v224_v57, %v110_v58 }
 0x123   :  { %v116_v60 = vmax.f32 %v111_v59, 0.0 }
 0x125   :  { %154 = vmatmul.f32.vlgmr.msra.gmra.mxu2 %v116_v60 }
 0x128   :  { %v113_v61 = vpop.f32.mrf.mxu1 }
 0x129   :  { %v114_v62 = vadd.f32 %v224_v57, %v113_v61 }
 0x12b   :  { %v117_v63 = vmax.f32 %v114_v62, 0.0 }
 0x12d   :  { %157 = vmatmul.f32.gmra.mxu2 %v117_v63 }
 0x1a8   :  { %v155_v1 = vpop.f32.mrf.mxu2 }
 0x1a9   :  { %v156_v2 = vadd.f32 %v225_v0, %v155_v1 }
 0x1ab   :  { %v205_v3 = vmul.f32 -1.442695, %v156_v2 }
 0x1ad   :  { %226 = vpow2.f32 %v205_v3 }
 0x1b0   :  { %v158_v4 = vpop.f32.mrf.mxu2 }
 0x1b1   :  { %v159_v5 = vadd.f32 %v225_v0, %v158_v4 }
 0x1b3   :  { %v227_v6 = vpop.eup %226  ;;  %v206_v7 = vmul.f32 -1.442695, %v159_v5 }
 0x1b4   :  { %v167_v8 = vadd.f32 1.0, %v227_v6 }
 0x1b5   :  { %228 = vpow2.f32 %v206_v7 }
 0x1b6   :  { %230 = vrcp.f32 %v167_v8  ;;  %v180_v14 = vand.u32 2147483648, %v167_v8  ;;  %v178_v16 = vand.u32 2147483647, %v167_v8  ;;  %vm174_vm1 = vweird.f32 %v167_v8 }
 0x1b8   :  { %v181_v19 = vor.u32 1.1754944e-38, %v180_v14  ;;  %vm179_vm3 = vcmp.eq.f32.partialorder %v178_v16, 8.507059e+37 }
 0x1bb   :  { %v229_v9 = vpop.eup %228 }
 0x1bc   :  { %v231_v10 = vpop.eup %230  ;;  %v168_v11 = vadd.f32 1.0, %v229_v9 }
 0x1bd   :  { %v170_v12 = vmul.f32 %v231_v10, %v167_v8  ;;  %vm175_vm0 = vweird.f32 %v231_v10 }
 0x1be   :  { %232 = vrcp.f32 %v168_v11  ;;  %vm176_vm2 = vmor %vm174_vm1, %vm175_vm0  ;;  %v195_v24 = vand.u32 2147483648, %v168_v11  ;;  %v193_v26 = vand.u32 2147483647, %v168_v11  ;;  %vm189_vm5 = vweird.f32 %v168_v11 }
 0x1bf   :  { %v171_v13 = vsub.f32 1.0, %v170_v12 }
 0x1c0   :  { %v196_v28 = vor.u32 1.1754944e-38, %v195_v24  ;;  %vm194_vm7 = vcmp.eq.f32.partialorder %v193_v26, 8.507059e+37 }
 0x1c1   :  { %v172_v15 = vmul.f32 %v231_v10, %v171_v13 }
 0x1c3   :  { %v173_v17 = vadd.f32 %v231_v10, %v172_v15 }
 0x1c4   :  { %v233_v18 = vpop.eup %232 }
 0x1c5   :  { %v177_v20 = vsel %vm176_vm2, %v231_v10, %v173_v17  ;;  %v185_v21 = vmul.f32 %v233_v18, %v168_v11  ;;  %vm190_vm4 = vweird.f32 %v233_v18 }
 0x1c6   :  { %v182_v22 = vsel %vm179_vm3, %v181_v19, %v177_v20  ;;  %vm191_vm6 = vmor %vm189_vm5, %vm190_vm4 }
 0x1c7   :  { %199 = vst [vmem:[%s446_s7] sm:$0xff] %v182_v22  ;;  %v186_v23 = vsub.f32 1.0, %v185_v21 }
 0x1c9   :  { %v187_v25 = vmul.f32 %v233_v18, %v186_v23 }
 0x1cb   :  { %v188_v27 = vadd.f32 %v233_v18, %v187_v25 }
 0x1cd   :  { %v192_v29 = vsel %vm191_vm6, %v233_v18, %v188_v27 }
 0x1ce   :  { %v197_v30 = vsel %vm194_vm7, %v196_v28, %v192_v29 }
 0x1cf   :  { %200 = vst [vmem:[%s446_s7 + $0x8] sm:$0xff] %v197_v30 }

</bundles_post_ra>
